<compile_context>
chip_gen: v7x
topology: tpu7x:2x2x1
jax: 0.10.0
libtpu: 0.0.40
codegen_flags: <defaults>
</compile_context>

<pallas_src>
import jax
import jax.numpy as jnp
from jax.experimental import pallas as pl
from jax.experimental.pallas import tpu as pltpu


def _disparity_regression_kernel(x_ref, o_ref):
    # x_ref: (D, tH, tW)  -- batch dim squeezed
    # o_ref: (tH, tW)     -- batch and channel dims squeezed
    D = x_ref.shape[0]

    def body(k, acc):
        # Running accumulator: acc += k * x[k]. Pure VPU adds/muls, keeps only one
        # (tH, tW) f32 slab live instead of a full (D, tH, tW) weighted product.
        return acc + k.astype(jnp.float32) * x_ref[k].astype(jnp.float32)

    acc = jax.lax.fori_loop(
        0, D, body,
        jnp.zeros(o_ref.shape, jnp.float32),
        unroll=(True if D <= 16 else 8),
    )
    o_ref[...] = acc.astype(o_ref.dtype)


def _pick_spatial_tiles(D, H, W, itemsize, budget_bytes=4 << 20):
    """Choose (tH, tW) so one input block fits the per-buffer VMEM budget."""
    # Lane axis last: full W when small, otherwise a multiple of 128 (lane-dense stores).
    tW = W if W <= 512 else 512
    # Sublane axis: multiple of 8 (or full H), sized so D*tH*tW*itemsize <= budget.
    max_th = max(1, budget_bytes // (D * tW * itemsize))
    if max_th >= H:
        tH = H
    else:
        tH = max(8, (max_th // 8) * 8)
    return tH, tW


def disparity_regression(x, maxdisp):
    """x: [N, D, H, W] softmaxed cost volume; returns [N, 1, H, W] (same dtype)."""
    N, D, H, W = x.shape
    assert D == maxdisp, "channel axis must equal maxdisp"

    tH, tW = _pick_spatial_tiles(D, H, W, x.dtype.itemsize)
    grid = (N, pl.cdiv(H, tH), pl.cdiv(W, tW))

    return pl.pallas_call(
        _disparity_regression_kernel,
        out_shape=jax.ShapeDtypeStruct((N, 1, H, W), x.dtype),
        grid=grid,
        in_specs=[
            # Batch squeezed, full disparity axis per block, spatial tile (tH, tW).
            pl.BlockSpec((None, D, tH, tW), lambda n, i, j: (n, 0, i, j)),
        ],
        out_specs=pl.BlockSpec((None, None, tH, tW), lambda n, i, j: (n, 0, i, j)),
        compiler_params=pltpu.CompilerParams(
            dimension_semantics=("parallel", "parallel", "parallel"),
        ),
    )(x)


if __name__ == "__main__":
    key = jax.random.PRNGKey(0)
    N, D, H, W = 2, 4, 16, 16          # batch, maxdisp, spatial
    logits = jax.random.normal(key, (N, D, H, W), dtype=jnp.float32)
    # In PSMNet this input is a softmax over the disparity axis; reproduce that.
    x = jax.nn.softmax(logits, axis=1)

    out = jax.block_until_ready(disparity_regression(x, maxdisp=D))

    # Pure-JAX reference check.
    disp = jnp.arange(D, dtype=jnp.float32).reshape(1, D, 1, 1)
    ref = jnp.sum(x * disp, axis=1, keepdims=True)
    assert out.shape == (N, 1, H, W)
    assert jnp.allclose(out, ref, atol=1e-5, rtol=1e-5)

    # bf16 cost-volume path (kernel still accumulates in f32).
    x16 = x.astype(jnp.bfloat16)
    out16 = jax.block_until_ready(disparity_regression(x16, maxdisp=D))
    ref16 = jnp.sum(x16.astype(jnp.float32) * disp, axis=1, keepdims=True)
    assert jnp.allclose(out16.astype(jnp.float32), ref16, atol=5e-2, rtol=5e-2)

    print("KERNEL_OK")
</pallas_src>

<mosaic_0001>
module attributes {stable_mosaic.version = 11 : i64} {
  func.func @_disparity_regression_kernel(%arg0: i32, %arg1: i32, %arg2: i32, %arg3: memref<1x4x16x16xf32, #tpu.memory_space<vmem>>, %arg4: memref<1x1x16x16xf32, #tpu.memory_space<vmem>>) attributes {dimension_semantics = [#tpu.dimension_semantics<parallel>, #tpu.dimension_semantics<parallel>, #tpu.dimension_semantics<parallel>], iteration_bounds = array<i64: 2, 1, 1>, scalar_prefetch = 0 : i64, scratch_operands = 0 : i64, tpu.core_type = #tpu.core_type<tc>, window_params = [{transform_indices = @transform_0, window_bounds = array<i64: 1, 4, 16, 16>}, {transform_indices = @transform_1, window_bounds = array<i64: 1, 1, 16, 16>}]} {
    %cst = arith.constant 0.000000e+00 : f32
    %0 = vector.broadcast %cst : f32 to vector<16x16xf32>
    %c0_i32 = arith.constant 0 : i32
    %1 = arith.sitofp %c0_i32 : i32 to f32
    %c0 = arith.constant 0 : index
    %2 = arith.index_cast %c0_i32 : i32 to index
    %c0_0 = arith.constant 0 : index
    %c0_1 = arith.constant 0 : index
    %3 = vector.load %arg3[%c0, %2, %c0_0, %c0_1] : memref<1x4x16x16xf32, #tpu.memory_space<vmem>>, vector<1x1x16x16xf32>
    %4 = vector.shape_cast %3 : vector<1x1x16x16xf32> to vector<16x16xf32>
    %5 = vector.broadcast %1 : f32 to vector<16x16xf32>
    %6 = arith.mulf %5, %4 : vector<16x16xf32>
    %7 = arith.addf %0, %6 : vector<16x16xf32>
    %c1_i32 = arith.constant 1 : i32
    %8 = arith.sitofp %c1_i32 : i32 to f32
    %c0_2 = arith.constant 0 : index
    %9 = arith.index_cast %c1_i32 : i32 to index
    %c0_3 = arith.constant 0 : index
    %c0_4 = arith.constant 0 : index
    %10 = vector.load %arg3[%c0_2, %9, %c0_3, %c0_4] : memref<1x4x16x16xf32, #tpu.memory_space<vmem>>, vector<1x1x16x16xf32>
    %11 = vector.shape_cast %10 : vector<1x1x16x16xf32> to vector<16x16xf32>
    %12 = vector.broadcast %8 : f32 to vector<16x16xf32>
    %13 = arith.mulf %12, %11 : vector<16x16xf32>
    %14 = arith.addf %7, %13 : vector<16x16xf32>
    %c2_i32 = arith.constant 2 : i32
    %15 = arith.sitofp %c2_i32 : i32 to f32
    %c0_5 = arith.constant 0 : index
    %16 = arith.index_cast %c2_i32 : i32 to index
    %c0_6 = arith.constant 0 : index
    %c0_7 = arith.constant 0 : index
    %17 = vector.load %arg3[%c0_5, %16, %c0_6, %c0_7] : memref<1x4x16x16xf32, #tpu.memory_space<vmem>>, vector<1x1x16x16xf32>
    %18 = vector.shape_cast %17 : vector<1x1x16x16xf32> to vector<16x16xf32>
    %19 = vector.broadcast %15 : f32 to vector<16x16xf32>
    %20 = arith.mulf %19, %18 : vector<16x16xf32>
    %21 = arith.addf %14, %20 : vector<16x16xf32>
    %c3_i32 = arith.constant 3 : i32
    %22 = arith.sitofp %c3_i32 : i32 to f32
    %c0_8 = arith.constant 0 : index
    %23 = arith.index_cast %c3_i32 : i32 to index
    %c0_9 = arith.constant 0 : index
    %c0_10 = arith.constant 0 : index
    %24 = vector.load %arg3[%c0_8, %23, %c0_9, %c0_10] : memref<1x4x16x16xf32, #tpu.memory_space<vmem>>, vector<1x1x16x16xf32>
    %25 = vector.shape_cast %24 : vector<1x1x16x16xf32> to vector<16x16xf32>
    %26 = vector.broadcast %22 : f32 to vector<16x16xf32>
    %27 = arith.mulf %26, %25 : vector<16x16xf32>
    %28 = arith.addf %21, %27 : vector<16x16xf32>
    %c4_i32 = arith.constant 4 : i32
    %c0_11 = arith.constant 0 : index
    %c0_12 = arith.constant 0 : index
    %c0_13 = arith.constant 0 : index
    %c0_14 = arith.constant 0 : index
    %29 = vector.load %arg4[%c0_11, %c0_12, %c0_13, %c0_14] : memref<1x1x16x16xf32, #tpu.memory_space<vmem>>, vector<1x1x16x16xf32>
    %30 = vector.shape_cast %29 : vector<1x1x16x16xf32> to vector<16x16xf32>
    %31 = vector.shape_cast %28 : vector<16x16xf32> to vector<1x1x16x16xf32>
    tpu.vector_store %arg4[%c0_11, %c0_12, %c0_13, %c0_14], %31 {strides = array<i32>} : memref<1x1x16x16xf32, #tpu.memory_space<vmem>>, vector<1x1x16x16xf32>,
    return
  }
  func.func @transform_0(%arg0: i32, %arg1: i32, %arg2: i32) -> (i32, i32, i32, i32) {
    %c0_i32 = arith.constant 0 : i32
    %c0_i32_0 = arith.constant 0 : i32
    return %arg0, %c0_i32, %arg1, %arg2 : i32, i32, i32, i32
  }
  func.func @transform_1(%arg0: i32, %arg1: i32, %arg2: i32) -> (i32, i32, i32, i32) {
    %c0_i32 = arith.constant 0 : i32
    %c0_i32_0 = arith.constant 0 : i32
    return %arg0, %c0_i32, %arg1, %arg2 : i32, i32, i32, i32
  }
}

</mosaic_0001>

<bundles_post_ra>
// kernel: tpu_custom_call.1
= control target key start
LH: loop header
LB: loop body
LE: loop exit
PB: predicated region body
PF: predicated region fallthrough
CT: control target
= control target key end

     0   :  { %6 = vsyncpa [#allocation3], 0  ;;  %s699_s0 = inlined_call_operand.hbm [shape: f32[2,4,16,16], index: 0, kind: input, shape index: {}]   ;;  %s700_s1 = inlined_call_operand.hbm [shape: f32[2,1,16,16], index: 1, kind: output, shape index: {}]  }
   0x1   :  { %8 = vsyncpa [#allocation3 + $0x1], 0 }
   0x2   :  { %9 = vsyncpa [#allocation4], 0 }
   0x3   :  { %11 = vsyncpa [#allocation4 + $0x1], 0  ;;  %s523_s6 = smov 0   ;;  %s525_s7 = smov 0  }
   0x4   :  { %s527_s8 = smov 0   ;;  %s529_s9 = smov 0  }
   0x5   :  { %s531_s10 = smov 0   ;;  %s533_s11 = smov 0  }
   0x6 LB: > { %s304_s12 = sadd.s32 4294967295, %s505_s11   ;;  %s305_s13 = sadd.s32 4294967294, %s505_s11   ;;  %s505_s11 = sphi %s533_s11, %s17_s11   ;;  %s501_s10 = sphi %s531_s10, %s715_s10   ;;  %s497_s9 = sphi %s529_s9, %s714_s9   ;;  %s493_s8 = sphi %s527_s8, %s713_s8   ;;  %s489_s7 = sphi %s525_s7, %s712_s7   ;;  %s485_s6 = sphi %s523_s6, %s711_s6  }
   0x7   : > { %s36_s14 = sadd.s32 1, %s501_s10  ;;  %s47_s15 = sadd.s32 1, %s493_s8 }
   0x8   : > { %p38_p0 = scmp.ge.s32.totalorder %s36_s14, 2  ;;  %p54_p1 = scmp.ne.s32.totalorder %s493_s8, %s489_s7 }
   0x9   : > { %p55_p2 = scmp.eq.s32.totalorder %s505_s11, 0  ;;  %p60_p3 = scmp.ne.s32.totalorder %s489_s7, %s485_s6 }
   0xa   : > { %s717_s14 = smov (%p38_p0, %s36_s14), 0  ;;  %p61_p5 = scmp.eq.s32.totalorder %s304_s12, 0 }
   0xb   : > { %p564_p4 = por %p55_p2, %p54_p1  ;;  %s40_s17 = ssub.s32 %s501_s10, %s717_s14 }
   0xc   : > { %p88_p6 = scmp.eq.s32.totalorder %s304_s12, 1  ;;  %p45_p7 = scmp.eq.s32.totalorder %s40_s17, 0 }
   0xd   : > { %p570_p8 = por %p61_p5, %p60_p3  ;;  %p94_p10 = scmp.eq.s32.totalorder %s305_s13, 1 }
   0xe   : > { %p574_p9 = por %p88_p6, %p54_p1  ;;  %p339_p13 = scmp.lt.s32.totalorder %s505_s11, 2 }
   0xf   : > { %s579_s20 = scalar_select %p45_p7, %s493_s8, %s47_s15  }
  0x10   : > { %s704_s19 = scalar_select %p574_p9, 1, 0 }
  0x11   : > { %p581_p11 = por %p94_p10, %p60_p3  ;;  %s114_s22 = sand.u32 1, %s493_s8  }
  0x12   : > { %s308_s23 = sshll.u32 %s114_s22, 6  ;;  %s325_s24 = sshll.u32 %s501_s10, 10 }
  0x13   : > { %s705_s21 = scalar_select %p581_p11, 1, 0 }
  0x14   : > { %s592_s27 = scalar_lea.hbm %s699_s0, %s325_s24  ;;  %s118_s28 = scalar_lea.vmem [#allocation2], %s308_s23 }
  0x15   : > { %s128_s29 = sshll.u32 %s118_s28, 4  ;;  %p598_p0 = pnand %p339_p13, %p564_p4  ;;  %s594_s29 = int_to_ptr.vmem [resolvable:$true] %s128_s29 }
  0x16   : > { %s603_s2 = scalar_lea.sflag [#allocation3], %s114_s22  ;;  %s393_s3 = scalar_lea.hbm %s592_s27, 1024 }
  0x17   : > { %p394_p2 = scmp.ne.s32.totalorder %s592_s27, %s393_s3  ;;  %p395_p3 = pneg %p598_p0 }
  0x18   : > { %s398_s12 = scalar_lea.hbm %s699_s0, 2048  ;;  %p399_p4 = scmp.lt.u32.totalorder %s592_s27, %s699_s0 }
  0x19   : > { %p396_p5 = pnand %p395_p3, %p394_p2  ;;  %p400_p7 = scmp.lt.u32.totalorder %s398_s12, %s393_s3 }
  0x1a   : > { %p402_p13 = scmp.lt.u32.totalorder %s393_s3, %s592_s27 }
  0x1b   : > { %p397_p6 = pneg %p396_p5  ;;  %p401_p10 = por %p400_p7, %p399_p4 }
  0x1d   : > { %p403_p12 = por %p402_p13, %p401_p10 }
  0x1f   : > { %p404_p1 = pnand %p403_p12, %p397_p6 }
  0x21   : > { %407 = shalt.err (!%p404_p1)
}
  0x22   : > { %s408_s16 = scalar_lea.vmem %s594_s29, 1024  ;;  %s507_s17 = smov [#allocation2]  }
  0x23   : > { %p409_p2 = scmp.ne.s32.totalorder %s594_s29, %s408_s16  ;;  %s413_s22 = sshll.u32 %s507_s17, 4  ;;  %s414_s22 = int_to_ptr.vmem [resolvable:$false] %s413_s22 }
  0x24   : > { %s415_s23 = scalar_lea.vmem %s414_s22, 2048  ;;  %p416_p9 = scmp.lt.s32.totalorder %s594_s29, %s414_s22 }
  0x25   : > { %p411_p5 = pnand %p409_p2, %p395_p3  ;;  %p417_p4 = scmp.lt.s32.totalorder %s415_s23, %s408_s16 }
  0x27   : > { %p412_p11 = pneg %p411_p5  ;;  %p418_p7 = por %p417_p4, %p416_p9 }
  0x29   : > { %p419_p10 = pnand %p418_p7, %p412_p11 }
  0x2b   : > { %422 = shalt.err (!%p419_p10)
}
  0x2c   : > { %s508_s24 = smov 128   ;;  %s509_s25 = smov 8  }
  0x2d   : > { %334 = dma.hbm_to_vmem [thread:$0]  (!%p598_p0), %s592_s27, 1024, %s594_s29, %s603_s2, %s508_s24, %s508_s24, %s509_s25  }
  0x2e   : > { %p136_p12 = scmp.lt.s32.totalorder %s505_s11, 3  ;;  %p707_p1 = scmp.ge.s32.totalorder %s505_s11, 1 }
  0x30   : > { %p137_p3 = pnand %p707_p1, %p136_p12 }
  0x31   : > { %s635_s26 = sand.u32 (!%p137_p3), 1, %s489_s7  }
  0x32   : > { %140 = sbr.rel (%p137_p3) target bundleno = 86 (0x56), region = 24  ;;  %s312_s28 = sshll.u32 (!%p137_p3), %s635_s26, 6 }
  0x33   : > { %s143_s3 = scalar_lea.sflag (!%p137_p3), [#allocation3], %s635_s26  ;;  %s146_s4 = scalar_lea.vmem (!%p137_p3), [#allocation2], %s312_s28 }
  0x39   : > { %476 = dma.done.wait (%p570_p8), %s143_s3, 1024  }
  0x3a   : > { %478 = vsyncadd (%p570_p8), %s143_s3, 4294966272  ;;  %s313_s27 = sshll.u32 %s635_s26, 4  ;;  %v167_v0 = vld [vmem:[%s146_s4] sm:$0xff]  ;;  %v314_v1 = vld [vmem:[%s146_s4 + $0x10] sm:$0xff]  ;;  %s326_s30 = sshll.u32 %s497_s9, 8  ;;  %vm192_vm0 = vcmask 130048  }
  0x3b   : > { %v316_v2 = vld [vmem:[%s146_s4 + $0x20] sm:$0xff]  ;;  %v169_v3 = vmul.f32 0.0, %v167_v0  ;;  %v318_v5 = vld [vmem:[%s146_s4 + $0x30] sm:$0xff]  ;;  %v168_v6 = vld [vmem:[%s146_s4 + $0x8] sm:$0xff]  ;;  %s164_s18 = scalar_lea.vmem [#allocation5], %s313_s27  ;;  %s650_s12 = scalar_lea.hbm %s700_s1, %s326_s30 }
  0x3c   : > { %v181_v4 = vmul.f32 2.0, %v316_v2  ;;  %v315_v7 = vld [vmem:[%s146_s4 + $0x18] sm:$0xff]  ;;  %v170_v8 = vmul.f32 0.0, %v168_v6  ;;  %v317_v9 = vld [vmem:[%s146_s4 + $0x28] sm:$0xff]  ;;  %v188_v12 = vmul.f32 3.0, %v318_v5  ;;  %s212_s29 = sshll.u32 %s164_s18, 4  ;;  %s645_s29 = int_to_ptr.vmem [resolvable:$true] %s212_s29 }
  0x3d   : > { %v319_v10 = vld [vmem:[%s146_s4 + $0x38] sm:$0xff]  ;;  %v176_v11 = vadd.f32 %v314_v1, %v169_v3  ;;  %v182_v13 = vmul.f32 2.0, %v317_v9  ;;  %s196_s13 = scalar_lea.sflag [#allocation4], %s635_s26  ;;  %s423_s15 = scalar_lea.vmem %s645_s29, 256 }
  0x3e   : > { %v177_v14 = vadd.f32 %v315_v7, %v170_v8  ;;  %v189_v15 = vmul.f32 3.0, %v319_v10  ;;  %p424_p8 = scmp.ne.s32.totalorder %s645_s29, %s423_s15  ;;  %p708_p9 = scmp.ne.s32.totalorder %s704_s19, 0 }
  0x3f   : > { %v183_v16 = vadd.f32 %v181_v4, %v176_v11  ;;  %s510_s9 = smov [#allocation5]  }
  0x40   : > { %v184_v17 = vadd.f32 %v182_v13, %v177_v14  ;;  %p425_p11 = pnand %p424_p8, %p708_p9  ;;  %s427_s16 = sshll.u32 %s510_s9, 4  ;;  %s428_s16 = int_to_ptr.vmem [resolvable:$false] %s427_s16 }
  0x41   : > { %v190_v18 = vadd.f32 %v188_v12, %v183_v16  ;;  %s429_s17 = scalar_lea.vmem %s428_s16, 512  ;;  %p430_p6 = scmp.lt.s32.totalorder %s645_s29, %s428_s16 }
  0x42   : > { %v191_v19 = vadd.f32 %v189_v15, %v184_v17  ;;  %p426_p0 = pneg %p425_p11  ;;  %p431_p13 = scmp.lt.s32.totalorder %s429_s17, %s423_s15 }
  0x43   : > { %193 = vst.msk [vmem:[%s164_s18] sm:$0xff] %vm192_vm0, %v190_v18 }
  0x44   : > { %194 = vst.msk [vmem:[%s164_s18 + $0x8] sm:$0xff] %vm192_vm0, %v191_v19  ;;  %p432_p2 = por %p431_p13, %p430_p6 }
  0x46   : > { %p433_p5 = pnand %p432_p2, %p426_p0 }
  0x48   : > { %436 = shalt.err (!%p433_p5)
}
  0x49   : > { %s437_s22 = scalar_lea.hbm %s650_s12, 256  ;;  %s441_s25 = scalar_lea.hbm %s700_s1, 512 }
  0x4a   : > { %p438_p4 = scmp.ne.s32.totalorder %s650_s12, %s437_s22  ;;  %p442_p12 = scmp.lt.u32.totalorder %s650_s12, %s700_s1 }
  0x4b   : > { %p443_p1 = scmp.lt.u32.totalorder %s441_s25, %s437_s22  ;;  %p445_p8 = scmp.lt.u32.totalorder %s437_s22, %s650_s12 }
  0x4c   : > { %p439_p7 = pnand %p438_p4, %p708_p9 }
  0x4d   : > { %p444_p3 = por %p443_p1, %p442_p12 }
  0x4e   : > { %p440_p10 = pneg %p439_p7 }
  0x4f   : > { %p446_p11 = por %p445_p8, %p444_p3 }
  0x51   : > { %p447_p0 = pnand %p446_p11, %p440_p10 }
  0x53   : > { %450 = shalt.err (!%p447_p0)
}
  0x54   : > { %s511_s4 = smov 128   ;;  %s512_s27 = smov 8  }
  0x55   : > { %329 = dma.vmem_to_hbm [thread:$0]  (%p708_p9), %s645_s29, 256, %s650_s12, %s196_s13, %s511_s4, %s511_s4, %s512_s27  }
  0x56 PF: > { %s227_s18 = sand.u32 1, %s485_s6   ;;  %p709_p6 = scmp.ne.s32.totalorder %s705_s21, 0 }
  0x57   : > { %p710_p13 = scmp.ge.s32.totalorder %s505_s11, 2  ;;  %s228_s30 = scalar_lea.sflag [#allocation4], %s227_s18 }
  0x59   : > { %p336_p2 = pnand %p710_p13, %p709_p6 }
  0x5b   : > { %480 = dma.done.wait (!%p336_p2), %s228_s30, 256  }
  0x5c   : > { %482 = vsyncadd (!%p336_p2), %s228_s30, 4294967040  ;;  %s17_s11 = sadd.s32 1, %s505_s11   ;;  %s711_s6 = smov %s489_s7 }
  0x5d   : > { %p14_p5 = scmp.ge.s32.totalorder %s17_s11, 4   ;;  %s712_s7 = smov %s493_s8 }
  0x5e   : > { %s713_s8 = smov %s579_s20  ;;  %s714_s9 = smov %s501_s10 }
  0x5f   : > { %s715_s10 = smov %s717_s14  ;;  %16 = sbr.rel (!%p14_p5) target bundleno = 6 (0x6), region = 72 }
  0x66   :  { %233 = vsyncpa [#allocation3], 1 }
  0x67   :  { %235 = vsyncpa [#allocation3 + $0x1], 1 }
  0x68   :  { %236 = vsyncpa [#allocation4], 1 }
  0x69   :  { %238 = vsyncpa [#allocation4 + $0x1], 1 }

</bundles_post_ra>
